<compile_context>
chip_gen: v6e
topology: v6e:2x2x1
jax: 0.10.0
libtpu: 0.0.40
codegen_flags: <defaults>
</compile_context>

<pallas_src>
import functools

import jax
import jax.numpy as jnp
from jax.experimental import pallas as pl
from jax.experimental.pallas import tpu as pltpu


def _sens_partial_kernel(pred_ref, gt_ref, inter_ref, gtsum_ref, *,
                         m_total, tile_m, rt, rt_s, handle_dup):
    s = pl.program_id(1)
    r = pl.program_id(2)

    p = pred_ref[...].astype(jnp.float32)     # (C, tile_m)
    g = gt_ref[...].astype(jnp.float32)

    needs_mask = handle_dup or (m_total % tile_m != 0)
    if needs_mask:
        # Global row-block index (must match the input index_map arithmetic).
        b = r + s * (rt - 1 - 2 * r)
        valid = m_total - b * tile_m           # in-bounds lanes in this block
        if handle_dup:
            # Odd block count split 2 ways: (s==1, r==rt_s-1) revisits block
            # rt_s-1 already covered by the first half -> contribute zero.
            dup = jnp.logical_and(s == 1, r == rt_s - 1)
            valid = jnp.where(dup, 0, valid)
        lane = jax.lax.broadcasted_iota(jnp.int32, pred_ref.shape, 1)
        mask = lane < valid
        pg = jnp.where(mask, p * g, 0.0)
        gm = jnp.where(mask, g, 0.0)
    else:
        pg = p * g
        gm = g

    @pl.when(r == 0)
    def _init():
        inter_ref[...] = pg
        gtsum_ref[...] = gm

    @pl.when(r != 0)
    def _acc():
        inter_ref[...] += pg
        gtsum_ref[...] += gm


def _pick_tile_m(M, C, itemsize, vmem_cap):
    """Pick a lane tile (multiple of 128) and a scoped VMEM limit per chip gen."""
    cap_m = pl.cdiv(M, 128) * 128              # never need more lanes than the volume
    if vmem_cap >= (96 << 20):                 # v5e / v6e class (128 MiB physical)
        vmem_limit = 48 << 20
        target_in_bytes = 4 << 20
    else:                                      # v7x class (64 MiB physical per TC)
        vmem_limit = 32 << 20
        target_in_bytes = 2 << 20

    # 2 double-buffered input blocks + 2 (f32) output/accumulator blocks.
    per_m_bytes = 4 * C * (itemsize + 4)
    budget_m = ((vmem_limit - (4 << 20)) // per_m_bytes) // 128 * 128
    target_m = (target_in_bytes // (C * itemsize)) // 128 * 128
    tile_m = max(128, min(cap_m, budget_m, target_m))

    # If even a single 128-lane tile exceeds the budget (very large C), raise the
    # limit as far as the generation allows instead of failing outright.
    # TODO(synk): for very large C, tile C into the grid (contiguous per-channel
    # DMAs + an extra parallel axis) instead of relying on a raised VMEM limit.
    needed = per_m_bytes * tile_m + (4 << 20)
    if needed > vmem_limit:
        vmem_limit = min(needed, max(vmem_cap - (8 << 20), vmem_limit))
    return int(tile_m), int(vmem_limit)


def sens_loss_joint(x, y, index=0, priority=1.0, max_tile_m=None):
    """x, y: lists/tuples of 5D arrays (N, C, D, H, W). Returns a scalar."""
    pred = x[index]
    gt = y[index]
    assert pred.shape == gt.shape
    N, C = pred.shape[0], pred.shape[1]
    M = 1
    for d in pred.shape[2:]:
        M *= int(d)

    # Metadata-only reshape (NCDHW is contiguous over D*H*W): no copies, no pad.
    pred3 = pred.reshape(N, C, M)
    gt3 = gt.reshape(N, C, M)
    itemsize = jnp.dtype(pred.dtype).itemsize

    try:
        vmem_cap = int(getattr(pltpu.get_tpu_info(), "vmem_capacity_bytes", 64 << 20))
    except Exception:
        vmem_cap = 64 << 20

    tile_m, vmem_limit = _pick_tile_m(M, C, itemsize, vmem_cap)
    if max_tile_m is not None:
        tile_m = max(128, min(tile_m, (int(max_tile_m) // 128) * 128))

    RT = pl.cdiv(M, tile_m)                     # total row blocks
    S = 2 if (N == 1 and RT >= 2) else 1        # extra parallel split for v7x when N==1
    RT_s = pl.cdiv(RT, S)
    handle_dup = (S * RT_s) > RT                # odd RT split 2 ways -> one duplicate block

    grid = (N, S, RT_s)

    def in_index_map(n, s, r):
        # s==0: blocks 0..RT_s-1 ; s==1: blocks RT-1, RT-2, ... (never out of bounds)
        return (n, 0, r + s * (RT - 1 - 2 * r))

    def out_index_map(n, s, r):
        return (n, s, 0, 0)

    kernel = functools.partial(
        _sens_partial_kernel,
        m_total=M, tile_m=tile_m, rt=RT, rt_s=RT_s, handle_dup=handle_dup)

    total = N * C * M
    out_elems = N * S * C * tile_m
    cost = pl.CostEstimate(
        flops=3 * total,
        transcendentals=0,
        bytes_accessed=int(2 * total * itemsize + 2 * out_elems * 4),
    )

    inter_p, gtsum_p = pl.pallas_call(
        kernel,
        out_shape=(
            jax.ShapeDtypeStruct((N, S, C, tile_m), jnp.float32),
            jax.ShapeDtypeStruct((N, S, C, tile_m), jnp.float32),
        ),
        grid_spec=pltpu.PrefetchScalarGridSpec(
            num_scalar_prefetch=0,
            grid=grid,
            in_specs=[
                pl.BlockSpec((pl.Squeezed(), C, tile_m), in_index_map),
                pl.BlockSpec((pl.Squeezed(), C, tile_m), in_index_map),
            ],
            out_specs=(
                pl.BlockSpec((pl.Squeezed(), pl.Squeezed(), C, tile_m), out_index_map),
                pl.BlockSpec((pl.Squeezed(), pl.Squeezed(), C, tile_m), out_index_map),
            ),
        ),
        compiler_params=pltpu.CompilerParams(
            dimension_semantics=("parallel", "parallel", "arbitrary"),
            vmem_limit_bytes=vmem_limit,
        ),
        cost_estimate=cost,
    )(pred3, gt3)

    # Tiny epilogue in plain JAX: lane+batch+split reduce, smoothing, mean, priority.
    intersection = inter_p.sum(axis=(0, 1, 3)) + 1.0     # (C,)
    union = gtsum_p.sum(axis=(0, 1, 3)) + 1.0
    loss = intersection / union
    return jnp.asarray(priority, jnp.float32) * (1.0 - jnp.mean(loss))


def _reference(x, y, index=0, priority=1.0):
    pred = x[index].astype(jnp.float32)
    gt = y[index].astype(jnp.float32)
    intersection = (pred * gt).sum(axis=(0, 2, 3, 4)) + 1.0
    union = gt.sum(axis=(0, 2, 3, 4)) + 1.0
    loss = intersection / union
    return priority * (1.0 - jnp.mean(loss))


if __name__ == "__main__":
    key = jax.random.PRNGKey(0)
    ks = jax.random.split(key, 6)

    def make_case(k1, k2, shape):
        pred = jax.nn.sigmoid(jax.random.normal(k1, shape, jnp.float32))
        gt = (jax.random.uniform(k2, shape) > 0.5).astype(jnp.float32)
        return [pred], [gt]

    # (shape (N,C,D,H,W), forced max_tile_m)
    cases = [
        ((2, 4, 4, 8, 8), None),     # 128-aligned volume, N=2 (baseline path)
        ((1, 3, 3, 7, 5), None),     # ragged volume (D*H*W=105 < 128): masked tail
        ((1, 3, 4, 8, 12), 128),     # N=1, tile forced to 128 -> 3 row blocks ->
                                     #   2-way parallel split + duplicate-block masking
    ]
    for i, (shape, mt) in enumerate(cases):
        x, y = make_case(ks[2 * i], ks[2 * i + 1], shape)
        out = jax.block_until_ready(
            sens_loss_joint(x, y, index=0, priority=1.0, max_tile_m=mt))
        ref = _reference(x, y, index=0, priority=1.0)
        assert jnp.allclose(out, ref, rtol=1e-5, atol=1e-5), (shape, out, ref)

    print("KERNEL_OK")
</pallas_src>

<mosaic_0001>
module attributes {stable_mosaic.version = 11 : i64} {
  func.func @_sens_partial_kernel(%arg0: i32, %arg1: i32, %arg2: i32, %arg3: memref<1x4x256xf32, #tpu.memory_space<vmem>>, %arg4: memref<1x4x256xf32, #tpu.memory_space<vmem>>, %arg5: memref<1x1x4x256xf32, #tpu.memory_space<vmem>>, %arg6: memref<1x1x4x256xf32, #tpu.memory_space<vmem>>) attributes {dimension_semantics = [#tpu.dimension_semantics<parallel>, #tpu.dimension_semantics<parallel>, #tpu.dimension_semantics<arbitrary>], iteration_bounds = array<i64: 2, 1, 1>, scalar_prefetch = 0 : i64, scratch_operands = 0 : i64, tpu.core_type = #tpu.core_type<tc>, window_params = [{transform_indices = @transform_0, window_bounds = array<i64: 1, 4, 256>}, {transform_indices = @transform_1, window_bounds = array<i64: 1, 4, 256>}, {transform_indices = @transform_2, window_bounds = array<i64: 1, 1, 4, 256>}, {transform_indices = @transform_3, window_bounds = array<i64: 1, 1, 4, 256>}]} {
    %c0 = arith.constant 0 : index
    %c0_0 = arith.constant 0 : index
    %c0_1 = arith.constant 0 : index
    %0 = vector.load %arg3[%c0, %c0_0, %c0_1] : memref<1x4x256xf32, #tpu.memory_space<vmem>>, vector<1x4x256xf32>
    %1 = vector.shape_cast %0 : vector<1x4x256xf32> to vector<4x256xf32>
    %c0_2 = arith.constant 0 : index
    %c0_3 = arith.constant 0 : index
    %c0_4 = arith.constant 0 : index
    %2 = vector.load %arg4[%c0_2, %c0_3, %c0_4] : memref<1x4x256xf32, #tpu.memory_space<vmem>>, vector<1x4x256xf32>
    %3 = vector.shape_cast %2 : vector<1x4x256xf32> to vector<4x256xf32>
    %4 = arith.mulf %1, %3 : vector<4x256xf32>
    %c0_i32 = arith.constant 0 : i32
    %5 = arith.cmpi eq, %arg2, %c0_i32 : i32
    %6 = arith.extui %5 : i1 to i32
    %c0_i32_5 = arith.constant 0 : i32
    %7 = arith.cmpi ne, %6, %c0_i32_5 : i32
    scf.if %7 {
      %c0_8 = arith.constant 0 : index
      %c0_9 = arith.constant 0 : index
      %c0_10 = arith.constant 0 : index
      %c0_11 = arith.constant 0 : index
      %11 = vector.load %arg5[%c0_8, %c0_9, %c0_10, %c0_11] : memref<1x1x4x256xf32, #tpu.memory_space<vmem>>, vector<1x1x4x256xf32>
      %12 = vector.shape_cast %11 : vector<1x1x4x256xf32> to vector<4x256xf32>
      %13 = vector.shape_cast %4 : vector<4x256xf32> to vector<1x1x4x256xf32>
      tpu.vector_store %arg5[%c0_8, %c0_9, %c0_10, %c0_11], %13 {strides = array<i32>} : memref<1x1x4x256xf32, #tpu.memory_space<vmem>>, vector<1x1x4x256xf32>,
      %c0_12 = arith.constant 0 : index
      %c0_13 = arith.constant 0 : index
      %c0_14 = arith.constant 0 : index
      %c0_15 = arith.constant 0 : index
      %14 = vector.load %arg6[%c0_12, %c0_13, %c0_14, %c0_15] : memref<1x1x4x256xf32, #tpu.memory_space<vmem>>, vector<1x1x4x256xf32>
      %15 = vector.shape_cast %14 : vector<1x1x4x256xf32> to vector<4x256xf32>
      %16 = vector.shape_cast %3 : vector<4x256xf32> to vector<1x1x4x256xf32>
      tpu.vector_store %arg6[%c0_12, %c0_13, %c0_14, %c0_15], %16 {strides = array<i32>} : memref<1x1x4x256xf32, #tpu.memory_space<vmem>>, vector<1x1x4x256xf32>,
    } else {
    }
    %c0_i32_6 = arith.constant 0 : i32
    %8 = arith.cmpi ne, %arg2, %c0_i32_6 : i32
    %9 = arith.extui %8 : i1 to i32
    %c0_i32_7 = arith.constant 0 : i32
    %10 = arith.cmpi ne, %9, %c0_i32_7 : i32
    scf.if %10 {
      %c0_8 = arith.constant 0 : index
      %c0_9 = arith.constant 0 : index
      %c0_10 = arith.constant 0 : index
      %c0_11 = arith.constant 0 : index
      %11 = vector.load %arg5[%c0_8, %c0_9, %c0_10, %c0_11] : memref<1x1x4x256xf32, #tpu.memory_space<vmem>>, vector<1x1x4x256xf32>
      %12 = vector.shape_cast %11 : vector<1x1x4x256xf32> to vector<4x256xf32>
      %13 = arith.addf %12, %4 : vector<4x256xf32>
      %c0_12 = arith.constant 0 : index
      %c0_13 = arith.constant 0 : index
      %c0_14 = arith.constant 0 : index
      %c0_15 = arith.constant 0 : index
      %14 = vector.load %arg5[%c0_12, %c0_13, %c0_14, %c0_15] : memref<1x1x4x256xf32, #tpu.memory_space<vmem>>, vector<1x1x4x256xf32>
      %15 = vector.shape_cast %14 : vector<1x1x4x256xf32> to vector<4x256xf32>
      %16 = vector.shape_cast %13 : vector<4x256xf32> to vector<1x1x4x256xf32>
      tpu.vector_store %arg5[%c0_12, %c0_13, %c0_14, %c0_15], %16 {strides = array<i32>} : memref<1x1x4x256xf32, #tpu.memory_space<vmem>>, vector<1x1x4x256xf32>,
      %c0_16 = arith.constant 0 : index
      %c0_17 = arith.constant 0 : index
      %c0_18 = arith.constant 0 : index
      %c0_19 = arith.constant 0 : index
      %17 = vector.load %arg6[%c0_16, %c0_17, %c0_18, %c0_19] : memref<1x1x4x256xf32, #tpu.memory_space<vmem>>, vector<1x1x4x256xf32>
      %18 = vector.shape_cast %17 : vector<1x1x4x256xf32> to vector<4x256xf32>
      %19 = arith.addf %18, %3 : vector<4x256xf32>
      %c0_20 = arith.constant 0 : index
      %c0_21 = arith.constant 0 : index
      %c0_22 = arith.constant 0 : index
      %c0_23 = arith.constant 0 : index
      %20 = vector.load %arg6[%c0_20, %c0_21, %c0_22, %c0_23] : memref<1x1x4x256xf32, #tpu.memory_space<vmem>>, vector<1x1x4x256xf32>
      %21 = vector.shape_cast %20 : vector<1x1x4x256xf32> to vector<4x256xf32>
      %22 = vector.shape_cast %19 : vector<4x256xf32> to vector<1x1x4x256xf32>
      tpu.vector_store %arg6[%c0_20, %c0_21, %c0_22, %c0_23], %22 {strides = array<i32>} : memref<1x1x4x256xf32, #tpu.memory_space<vmem>>, vector<1x1x4x256xf32>,
    } else {
    }
    return
  }
  func.func @transform_0(%arg0: i32, %arg1: i32, %arg2: i32) -> (i32, i32, i32) {
    %c2_i32 = arith.constant 2 : i32
    %0 = arith.muli %c2_i32, %arg2 : i32
    %c0_i32 = arith.constant 0 : i32
    %1 = arith.subi %c0_i32, %0 : i32
    %2 = arith.muli %arg1, %1 : i32
    %3 = arith.addi %arg2, %2 : i32
    %c0_i32_0 = arith.constant 0 : i32
    %c0_i32_1 = arith.constant 0 : i32
    return %arg0, %c0_i32_0, %3 : i32, i32, i32
  }
  func.func @transform_1(%arg0: i32, %arg1: i32, %arg2: i32) -> (i32, i32, i32) {
    %c2_i32 = arith.constant 2 : i32
    %0 = arith.muli %c2_i32, %arg2 : i32
    %c0_i32 = arith.constant 0 : i32
    %1 = arith.subi %c0_i32, %0 : i32
    %2 = arith.muli %arg1, %1 : i32
    %3 = arith.addi %arg2, %2 : i32
    %c0_i32_0 = arith.constant 0 : i32
    %c0_i32_1 = arith.constant 0 : i32
    return %arg0, %c0_i32_0, %3 : i32, i32, i32
  }
  func.func @transform_2(%arg0: i32, %arg1: i32, %arg2: i32) -> (i32, i32, i32, i32) {
    %c0_i32 = arith.constant 0 : i32
    %c0_i32_0 = arith.constant 0 : i32
    %c0_i32_1 = arith.constant 0 : i32
    return %arg0, %arg1, %c0_i32, %c0_i32_0 : i32, i32, i32, i32
  }
  func.func @transform_3(%arg0: i32, %arg1: i32, %arg2: i32) -> (i32, i32, i32, i32) {
    %c0_i32 = arith.constant 0 : i32
    %c0_i32_0 = arith.constant 0 : i32
    %c0_i32_1 = arith.constant 0 : i32
    return %arg0, %arg1, %c0_i32, %c0_i32_0 : i32, i32, i32, i32
  }
}

</mosaic_0001>

<bundles_post_ra>
// kernel: tpu_custom_call.1
= control target key start
LH: loop header
LB: loop body
LE: loop exit
PB: predicated region body
PF: predicated region fallthrough
CT: control target
= control target key end

     0   :  { %9 = vsyncpa [#allocation3], 0  ;;  %s1014_s0 = inlined_call_operand.hbm [shape: f32[2,4,256], index: 0, kind: input, shape index: {}]   ;;  %s1015_s1 = inlined_call_operand.hbm [shape: f32[2,4,256], index: 1, kind: input, shape index: {}]   ;;  %s1016_s2 = inlined_call_operand.hbm [shape: f32[2,1,4,256], index: 2, kind: output, shape index: {0}]   ;;  %s1017_s3 = inlined_call_operand.hbm [shape: f32[2,1,4,256], index: 3, kind: output, shape index: {1}]  }
   0x1   :  { %11 = vsyncpa [#allocation3 + $0x1], 0 }
   0x2   :  { %12 = vsyncpa [#allocation6], 0 }
   0x3   :  { %14 = vsyncpa [#allocation6 + $0x1], 0 }
   0x4   :  { %15 = vsyncpa [#allocation4], 0 }
   0x5   :  { %17 = vsyncpa [#allocation4 + $0x1], 0 }
   0x6   :  { %18 = vsyncpa [#allocation9], 0 }
   0x7   :  { %20 = vsyncpa [#allocation9 + $0x1], 0  ;;  %s803_s12 = smov 0   ;;  %s805_s13 = smov 0  }
   0x8   :  { %s807_s14 = smov 0   ;;  %s809_s15 = smov 0  }
   0x9   :  { %s811_s16 = smov 0   ;;  %s813_s17 = smov 0  }
   0xa LB: > { %s508_s18 = sadd.s32 4294967295, %s777_s17   ;;  %s509_s19 = sadd.s32 4294967294, %s777_s17   ;;  %s777_s17 = sphi %s813_s17, %s26_s17   ;;  %s773_s16 = sphi %s811_s16, %s1029_s16   ;;  %s769_s15 = sphi %s809_s15, %s1028_s15   ;;  %s765_s14 = sphi %s807_s14, %s1027_s14   ;;  %s761_s13 = sphi %s805_s13, %s1026_s13   ;;  %s757_s12 = sphi %s803_s12, %s1025_s12  }
   0xb   : > { %s45_s20 = sadd.s32 1, %s773_s16  ;;  %s62_s21 = sadd.s32 1, %s765_s14 }
   0xc   : > { %p47_p0 = scmp.ge.s32.totalorder %s45_s20, 2  ;;  %p69_p1 = scmp.ne.s32.totalorder %s765_s14, %s761_s13 }
   0xd   : > { %p70_p2 = scmp.eq.s32.totalorder %s777_s17, 0  ;;  %p75_p3 = scmp.ne.s32.totalorder %s761_s13, %s757_s12 }
   0xe   : > { %s1031_s20 = smov (%p47_p0, %s45_s20), 0  ;;  %p76_p5 = scmp.eq.s32.totalorder %s508_s18, 0 }
   0xf   : > { %p844_p4 = por %p70_p2, %p69_p1  ;;  %s57_s23 = ssub.s32 %s773_s16, %s1031_s20 }
  0x10   : > { %p137_p6 = scmp.eq.s32.totalorder %s508_s18, 1  ;;  %p60_p7 = scmp.eq.s32.totalorder %s57_s23, 0 }
  0x11   : > { %p850_p8 = por %p76_p5, %p75_p3  ;;  %p143_p10 = scmp.eq.s32.totalorder %s509_s19, 1 }
  0x12   : > { %p854_p9 = por %p137_p6, %p69_p1  ;;  %p557_p13 = scmp.lt.s32.totalorder %s777_s17, 2 }
  0x13   : > { %s859_s26 = scalar_select %p60_p7, %s765_s14, %s62_s21  }
  0x14   : > { %p861_p11 = por %p143_p10, %p75_p3  ;;  %s868_s28 = sand.u32 1, %s765_s14  }
  0x15   : > { %s512_s29 = sshll.u32 %s868_s28, 3  ;;  %s531_s30 = sshll.u32 %s773_s16, 7 }
  0x16   : > { %s207_s6 = scalar_lea.hbm %s1014_s0, %s531_s30  ;;  %s195_s7 = scalar_lea.vmem [#allocation2], %s512_s29 }
  0x17   : > { %s209_s8 = sshll.u32 %s195_s7, 4  ;;  %p877_p0 = pnand %p557_p13, %p844_p4  ;;  %s210_s8 = int_to_ptr.vmem [resolvable:$true] %s209_s8 }
  0x18   : > { %p518_p1 = scmp.ge.s32.totalorder %s777_s17, 1  ;;  %p239_p2 = scmp.lt.s32.totalorder %s777_s17, 3 }
  0x19   : > { %s192_s10 = scalar_lea.sflag [#allocation3], %s868_s28  ;;  %p609_p3 = pneg %p877_p0 }
  0x1a   : > { %s620_s11 = scalar_lea.vmem %s210_s8, 128  ;;  %s779_s18 = smov [#allocation2]  }
  0x1b   : > { %p621_p5 = scmp.ne.s32.totalorder %s210_s8, %s620_s11  ;;  %s625_s19 = sshll.u32 %s779_s18, 4  ;;  %s626_s19 = int_to_ptr.vmem [resolvable:$false] %s625_s19 }
  0x1c   : > { %s627_s21 = scalar_lea.vmem %s626_s19, 256  ;;  %p628_p4 = scmp.lt.s32.totalorder %s210_s8, %s626_s19 }
  0x1d   : > { %p623_p6 = pnand %p621_p5, %p609_p3  ;;  %p629_p10 = scmp.lt.s32.totalorder %s627_s21, %s620_s11 }
  0x1f   : > { %p624_p7 = pneg %p623_p6  ;;  %p630_p13 = por %p629_p10, %p628_p4 }
  0x21   : > { %p631_p12 = pnand %p630_p13, %p624_p7 }
  0x23   : > { %634 = shalt.err (!%p631_p12)
}
  0x24   : > { %546 = dma.hbm_to_vmem [thread:$0]  (!%p877_p0), %s207_s6, 128, %s210_s8, %s192_s10  }
  0x25   : > { %p895_p5 = pnand %p518_p1, %p239_p2  ;;  %s232_s5 = scalar_lea.hbm %s1015_s1, %s531_s30 }
  0x26   : > { %s220_s7 = scalar_lea.vmem [#allocation5], %s512_s29  ;;  %s217_s18 = scalar_lea.sflag [#allocation6], %s868_s28 }
  0x27   : > { %s234_s11 = sshll.u32 %s220_s7, 4  ;;  %s780_s6 = smov [#allocation5]   ;;  %s235_s11 = int_to_ptr.vmem [resolvable:$true] %s234_s11 }
  0x28   : > { %s648_s19 = scalar_lea.vmem %s235_s11, 128  ;;  %s653_s8 = sshll.u32 %s780_s6, 4  ;;  %s654_s8 = int_to_ptr.vmem [resolvable:$false] %s653_s8 }
  0x29   : > { %p649_p12 = scmp.ne.s32.totalorder %s235_s11, %s648_s19  ;;  %s655_s10 = scalar_lea.vmem %s654_s8, 256 }
  0x2a   : > { %p656_p1 = scmp.lt.s32.totalorder %s235_s11, %s654_s8  ;;  %p657_p2 = scmp.lt.s32.totalorder %s655_s10, %s648_s19 }
  0x2b   : > { %p651_p6 = pnand %p649_p12, %p609_p3 }
  0x2c   : > { %p658_p4 = por %p657_p2, %p656_p1 }
  0x2d   : > { %p652_p7 = pneg %p651_p6 }
  0x2f   : > { %p659_p10 = pnand %p658_p4, %p652_p7 }
  0x31   : > { %662 = shalt.err (!%p659_p10)
}
  0x32   : > { %549 = dma.hbm_to_vmem [thread:$0]  (!%p877_p0), %s232_s5, 128, %s235_s11, %s217_s18  }
  0x33   : > { %243 = sbr.rel (%p895_p5) target bundleno = 106 (0x6a), region = 28  ;;  %s911_s28 = sand.u32 (!%p895_p5), 1, %s761_s13  }
  0x34   : > { %s914_s29 = sshll.u32 (!%p895_p5), %s911_s28, 3  ;;  %s246_s30 = scalar_lea.sflag (!%p895_p5), [#allocation3], %s911_s28 }
  0x35   : > { %s249_s21 = scalar_lea.vmem (!%p895_p5), [#allocation2], %s914_s29 }
  0x38   : > { %740 = dma.done.wait (%p850_p8), %s246_s30, 128  }
  0x39   : > { %742 = vsyncadd (%p850_p8), %s246_s30, 4294967168  ;;  %s255_s9 = scalar_lea.sflag [#allocation6], %s911_s28  ;;  %s258_s22 = scalar_lea.vmem [#allocation5], %s914_s29 }
  0x3a   : > { %744 = dma.done.wait (%p850_p8), %s255_s9, 128  }
  0x3b   : > { %746 = vsyncadd (%p850_p8), %s255_s9, 4294967168  ;;  %s290_s23 = scalar_lea.vmem [#allocation8], %s914_s29  ;;  %s533_s5 = sshll.u32 %s769_s15, 7  ;;  %v301_v0 = vld [vmem:[%s249_s21] sm:$0xff]  ;;  %v302_v1 = vld [vmem:[%s258_s22] sm:$0xff] }
  0x3c   : > { %s358_s4 = sshll.u32 %s290_s23, 4  ;;  %s283_s7 = scalar_lea.vmem [#allocation7], %s914_s29  ;;  %v303_v2 = vmul.f32 %v302_v1, %v301_v0  ;;  %309 = vst [vmem:[%s290_s23] sm:$0xff] %v302_v1  ;;  %s933_s4 = int_to_ptr.vmem [resolvable:$true] %s358_s4 }
  0x3d   : > { %s342_s11 = sshll.u32 %s283_s7, 4  ;;  %s938_s24 = scalar_lea.hbm %s1017_s3, %s533_s5  ;;  %s940_s11 = int_to_ptr.vmem [resolvable:$true] %s342_s11 }
  0x3e   : > { %s945_s8 = scalar_lea.hbm %s1016_s2, %s533_s5  ;;  %s326_s10 = scalar_lea.sflag [#allocation9], %s911_s28 }
  0x3f   : > { %s663_s30 = scalar_lea.vmem %s933_s4, 128  ;;  %s781_s9 = smov [#allocation8]  }
  0x40   : > { %p664_p8 = scmp.ne.s32.totalorder %s933_s4, %s663_s30  ;;  %s667_s18 = sshll.u32 %s781_s9, 4  ;;  %s668_s18 = int_to_ptr.vmem [resolvable:$false] %s667_s18 }
  0x41   : > { %s669_s21 = scalar_lea.vmem %s668_s18, 256  ;;  %p670_p13 = scmp.lt.s32.totalorder %s933_s4, %s668_s18 }
  0x42   : > { %p665_p0 = pnand %p664_p8, %p854_p9  ;;  %p671_p5 = scmp.lt.s32.totalorder %s669_s21, %s663_s30 }
  0x44   : > { %p666_p3 = pneg %p665_p0  ;;  %p672_p12 = por %p671_p5, %p670_p13 }
  0x46   : > { %p673_p6 = pnand %p672_p12, %p666_p3 }
  0x48   : > { %676 = shalt.err (!%p673_p6)
}
  0x49   : > { %s677_s22 = scalar_lea.hbm %s938_s24, 128  ;;  %s681_s19 = scalar_lea.hbm %s1017_s3, 256 }
  0x4a   : > { %p678_p7 = scmp.ne.s32.totalorder %s938_s24, %s677_s22  ;;  %p682_p4 = scmp.lt.s32.totalorder %s938_s24, %s1017_s3 }
  0x4b   : > { %p683_p10 = scmp.lt.s32.totalorder %s681_s19, %s677_s22 }
  0x4c   : > { %p679_p1 = pnand %p678_p7, %p854_p9 }
  0x4d   : > { %p684_p8 = por %p683_p10, %p682_p4 }
  0x4e   : > { %p680_p2 = pneg %p679_p1 }
  0x50   : > { %p685_p0 = pnand %p684_p8, %p680_p2 }
  0x52   : > { %688 = shalt.err (!%p685_p0)
}
  0x53   : > { %540 = dma.vmem_to_hbm [thread:$0]  (%p854_p9), %s933_s4, 128, %s938_s24, %s326_s10   ;;  %308 = vst [vmem:[%s283_s7] sm:$0xff] %v303_v2 }
  0x54   : > { %s321_s30 = scalar_lea.sflag [#allocation4], %s911_s28  ;;  %s689_s9 = scalar_lea.vmem %s940_s11, 128 }
  0x55   : > { %p690_p3 = scmp.ne.s32.totalorder %s940_s11, %s689_s9  ;;  %s782_s18 = smov [#allocation7]  }
  0x56   : > { %s693_s21 = sshll.u32 %s782_s18, 4  ;;  %s694_s21 = int_to_ptr.vmem [resolvable:$false] %s693_s21 }
  0x57   : > { %p691_p13 = pnand %p690_p3, %p854_p9  ;;  %s695_s22 = scalar_lea.vmem %s694_s21, 256 }
  0x58   : > { %p696_p12 = scmp.lt.s32.totalorder %s940_s11, %s694_s21  ;;  %p697_p6 = scmp.lt.s32.totalorder %s695_s22, %s689_s9 }
  0x59   : > { %p692_p5 = pneg %p691_p13 }
  0x5a   : > { %p698_p7 = por %p697_p6, %p696_p12 }
  0x5c   : > { %p699_p1 = pnand %p698_p7, %p692_p5 }
  0x5e   : > { %702 = shalt.err (!%p699_p1)
}
  0x5f   : > { %s703_s29 = scalar_lea.hbm %s945_s8, 128  ;;  %s707_s7 = scalar_lea.hbm %s1016_s2, 256 }
  0x60   : > { %p704_p2 = scmp.ne.s32.totalorder %s945_s8, %s703_s29  ;;  %p708_p8 = scmp.lt.s32.totalorder %s945_s8, %s1016_s2 }
  0x61   : > { %p709_p0 = scmp.lt.s32.totalorder %s707_s7, %s703_s29 }
  0x62   : > { %p705_p4 = pnand %p704_p2, %p854_p9 }
  0x63   : > { %p710_p3 = por %p709_p0, %p708_p8 }
  0x64   : > { %p706_p10 = pneg %p705_p4 }
  0x66   : > { %p711_p13 = pnand %p710_p3, %p706_p10 }
  0x68   : > { %714 = shalt.err (!%p711_p13)
}
  0x69   : > { %539 = dma.vmem_to_hbm [thread:$0]  (%p854_p9), %s940_s11, 128, %s945_s8, %s321_s30  }
  0x6a PF: > { %s370_s23 = sand.u32 1, %s757_s12   ;;  %p1024_p5 = scmp.ge.s32.totalorder %s777_s17, 2 }
  0x6b   : > { %s371_s5 = scalar_lea.sflag [#allocation4], %s370_s23 }
  0x6c   : > { %p551_p12 = pnand %p1024_p5, %p861_p11 }
  0x6e   : > { %p552_p6 = pneg %p551_p12 }
  0x70   : > { %748 = dma.done.wait (%p552_p6), %s371_s5, 128  }
  0x71   : > { %750 = vsyncadd (%p552_p6), %s371_s5, 4294967168  ;;  %s380_s19 = scalar_lea.sflag [#allocation9], %s370_s23 }
  0x72   : > { %752 = dma.done.wait (%p552_p6), %s380_s19, 128  }
  0x73   : > { %754 = vsyncadd (%p552_p6), %s380_s19, 4294967168  ;;  %s26_s17 = sadd.s32 1, %s777_s17   ;;  %s1025_s12 = smov %s761_s13 }
  0x74   : > { %p23_p7 = scmp.ge.s32.totalorder %s26_s17, 4   ;;  %s1026_s13 = smov %s765_s14 }
  0x75   : > { %s1027_s14 = smov %s859_s26  ;;  %s1028_s15 = smov %s773_s16 }
  0x76   : > { %s1029_s16 = smov %s1031_s20  ;;  %25 = sbr.rel (!%p23_p7) target bundleno = 10 (0xa), region = 111 }
  0x7b   :  { %385 = vsyncpa [#allocation3], 1 }
  0x7c   :  { %387 = vsyncpa [#allocation3 + $0x1], 1 }
  0x7d   :  { %388 = vsyncpa [#allocation6], 1 }
  0x7e   :  { %390 = vsyncpa [#allocation6 + $0x1], 1 }
  0x7f   :  { %391 = vsyncpa [#allocation4], 1 }
  0x80   :  { %393 = vsyncpa [#allocation4 + $0x1], 1 }
  0x81   :  { %394 = vsyncpa [#allocation9], 1 }
  0x82   :  { %396 = vsyncpa [#allocation9 + $0x1], 1 }

</bundles_post_ra>
